<compile_context>
chip_gen: v7x
topology: tpu7x:2x2x1
jax: 0.10.0
libtpu: 0.0.40
codegen_flags: <defaults>
</compile_context>

<pallas_src>
import functools

import jax
import jax.numpy as jnp
from jax.experimental import pallas as pl
from jax.experimental.pallas import tpu as pltpu


def _column_to_row(col):
    """(m, 1) sublane column -> (1, m) lane-major row.

    Diagonal select + sublane-axis reduction per 128-row chunk. Avoids relying
    on Mosaic transpose/reshape support for narrow (m, 1) shapes. Caller
    guarantees m <= 128 or m % 128 == 0. jnp.where (not multiply-by-mask) keeps
    NaN/junk rows from a ragged tail block contained to their own lane.
    """
    m = col.shape[0]
    parts = []
    for k in range(0, m, 128):
        size = min(128, m - k)
        sub = col[k:k + size, :]                                    # (size, 1)
        r = jax.lax.broadcasted_iota(jnp.int32, (size, size), 0)
        c = jax.lax.broadcasted_iota(jnp.int32, (size, size), 1)
        diag = jnp.where(r == c, sub, 0.0)                          # (size, size)
        parts.append(jnp.sum(diag, axis=0, keepdims=True))          # (1, size)
    return parts[0] if len(parts) == 1 else jnp.concatenate(parts, axis=-1)


def _focal_loss_kernel(x_ref, side_ref, o_ref, *, gamma):
    x = x_ref[...].astype(jnp.float32)        # (TN, C) logits (native-dtype stream)
    side = side_ref[...]                      # (TN, 2) f32: [target, alpha[target]]
    t = side[:, 0:1].astype(jnp.int32)        # (TN, 1) class ids (exact for C < 2^24)
    a = side[:, 1:2]                          # (TN, 1) per-row alpha

    # --- log-sum-exp softmax over classes (lane axis) ---
    m = jnp.max(x, axis=-1, keepdims=True)                       # (TN, 1)
    e = jnp.exp(x - m)                                           # (TN, C)  EUP
    sum_e = jnp.sum(e, axis=-1, keepdims=True)                   # (TN, 1)  XLU

    # --- true-class logit via select + lane reduce (scatter_ equivalent) ---
    col = jax.lax.broadcasted_iota(jnp.int32, x.shape, 1)
    x_t = jnp.sum(jnp.where(col == t, x, 0.0), axis=-1, keepdims=True)

    # log p_t = x_t - m - log(sum_e); clamp <= 0 so p_t <= 1 (protects the
    # general-gamma log1p branch from rounding past 0).
    log_p = jnp.minimum((x_t - m) - jnp.log(sum_e), 0.0)         # (TN, 1)
    p_t = jnp.exp(log_p)
    one_minus_p = 1.0 - p_t

    if gamma == 2.0:                     # common case: plain VPU multiply
        focal = one_minus_p * one_minus_p
    elif gamma == 1.0:
        focal = one_minus_p
    elif gamma == 0.0:
        focal = jnp.ones_like(one_minus_p)
    else:                                # general gamma: only on the tiny column
        focal = jnp.exp(gamma * jnp.log1p(-p_t))

    loss = -a * focal * log_p                                     # (TN, 1)

    # Lane-dense store: unmasked full-lane stores + contiguous writeback DMA.
    o_ref[0] = _column_to_row(loss).astype(o_ref.dtype)           # (1, TN)


def _round_up(x, m):
    return ((x + m - 1) // m) * m


def focal_loss(inputs, targets, alpha, gamma=2.0, tile_n=1024):
    """Per-sample focal loss (reduction='none', matching the PyTorch module).

    inputs:  (N, C) logits (streamed in their native dtype: f32/bf16/...)
    targets: (N,)   int class ids
    alpha:   (C,) or (C, 1) float per-class weights
    returns: (N, 1) float32
    """
    N, C = inputs.shape
    itemsize = jnp.dtype(inputs.dtype).itemsize
    pack = max(8, 32 // max(itemsize, 1))          # sublane packing granule

    t = targets.astype(jnp.int32)
    # Gather alpha per row in the wrapper (cheap (N,) gather) and pack
    # [target, alpha[target]] into one (N, 2) side input -> one narrow DMA/step.
    a_row = jnp.reshape(alpha, (-1,)).astype(jnp.float32)[t]             # (N,)
    side = jnp.stack([t.astype(jnp.float32), a_row], axis=-1)            # (N, 2)

    # Row tile: ~2 MiB of logits per block (>=85% of HBM roofline) so the
    # double-buffered pipeline + in-kernel f32 upcast intermediates fit scoped
    # VMEM on v5e/v6e/v7x.  Multi-tile blocks are 128-aligned (lane-dense
    # output chunks) and clamped so v7x megacore always gets >= 2 grid steps.
    rows_cap = max(pack, ((2 << 20) // (itemsize * C)) // pack * pack)
    tn = min(tile_n, rows_cap)
    if N <= 128 and tn >= N:
        tn = _round_up(N, pack)                           # single tile
    elif tn >= 128:
        tn = min((tn // 128) * 128, max(128, _round_up(pl.cdiv(N, 2), 128)))
    else:
        tn = max(pack, (tn // pack) * pack)               # very wide C fallback
    grid = pl.cdiv(N, tn)                                 # ragged tail: no pad copy

    kernel = functools.partial(_focal_loss_kernel, gamma=float(gamma))

    out = pl.pallas_call(
        kernel,
        out_shape=jax.ShapeDtypeStruct((grid, 1, tn), jnp.float32),
        grid_spec=pltpu.PrefetchScalarGridSpec(
            num_scalar_prefetch=0,
            grid=(grid,),
            in_specs=[
                pl.BlockSpec((tn, C), lambda i: (i, 0)),   # logits, native dtype
                pl.BlockSpec((tn, 2), lambda i: (i, 0)),   # [target, alpha] pair
            ],
            out_specs=pl.BlockSpec((1, 1, tn), lambda i: (i, 0, 0)),
        ),
        compiler_params=pltpu.CompilerParams(
            dimension_semantics=("parallel",),             # rows independent -> megacore
            vmem_limit_bytes=32 * 1024 * 1024),
        cost_estimate=pl.CostEstimate(
            flops=8 * N * C,
            transcendentals=N * C + 3 * N,
            bytes_accessed=N * C * itemsize + N * 8 + grid * tn * 4),
    )(inputs, side)

    # Tail lanes of the last block were computed from unread rows; rows are
    # independent, so just slice them off.
    return out.reshape(-1)[:N].reshape(N, 1)


def focal_loss_ref(inputs, targets, alpha, gamma=2.0):
    # Pure-JAX reference (same math as the PyTorch module, reduction='none').
    logp = jax.nn.log_softmax(inputs.astype(jnp.float32), axis=-1)
    logp_t = jnp.take_along_axis(logp, targets[:, None], axis=-1)         # (N, 1)
    p_t = jnp.exp(logp_t)
    a = jnp.reshape(alpha, (-1,)).astype(jnp.float32)[targets][:, None]
    return -a * (1.0 - p_t) ** gamma * logp_t


if __name__ == "__main__":
    key = jax.random.PRNGKey(0)
    k1, k2, k3, k4, k5 = jax.random.split(key, 5)

    # Case 1: module defaults (alpha=None -> ones(C, 1)), small shapes, f32.
    N, C = 8, 16
    inputs = jax.random.normal(k1, (N, C), dtype=jnp.float32)
    targets = jax.random.randint(k2, (N,), 0, C, dtype=jnp.int32)
    alpha = jnp.ones((C, 1), dtype=jnp.float32)

    out = jax.block_until_ready(focal_loss(inputs, targets, alpha, gamma=2.0))
    ref = focal_loss_ref(inputs, targets, alpha, gamma=2.0)
    assert out.shape == (N, 1)
    assert jnp.allclose(out, ref, atol=1e-5, rtol=1e-5)

    # Case 2: multi-tile grid + ragged tail (no padding copy) + native bf16
    # streaming + non-uniform alpha.
    N2, C2 = 300, 256
    inputs2 = (jax.random.normal(k3, (N2, C2), dtype=jnp.float32) * 3.0
               ).astype(jnp.bfloat16)
    targets2 = jax.random.randint(k4, (N2,), 0, C2, dtype=jnp.int32)
    alpha2 = jax.random.uniform(k5, (C2,), dtype=jnp.float32,
                                minval=0.1, maxval=1.0)

    out2 = jax.block_until_ready(
        focal_loss(inputs2, targets2, alpha2, gamma=2.0, tile_n=128))
    ref2 = focal_loss_ref(inputs2, targets2, alpha2, gamma=2.0)
    assert out2.shape == (N2, 1)
    assert jnp.allclose(out2, ref2, atol=1e-5, rtol=1e-4)

    print("KERNEL_OK")
</pallas_src>

<mosaic_0001>
module attributes {stable_mosaic.version = 11 : i64} {
  func.func @_focal_loss_kernel(%arg0: i32, %arg1: memref<8x16xf32, #tpu.memory_space<vmem>>, %arg2: memref<8x2xf32, #tpu.memory_space<vmem>>, %arg3: memref<1x1x8xf32, #tpu.memory_space<vmem>>) attributes {dimension_semantics = [#tpu.dimension_semantics<parallel>], iteration_bounds = array<i64: 1>, scalar_prefetch = 0 : i64, scratch_operands = 0 : i64, tpu.core_type = #tpu.core_type<tc>, window_params = [{transform_indices = @transform_0, window_bounds = array<i64: 8, 16>}, {transform_indices = @transform_1, window_bounds = array<i64: 8, 2>}, {transform_indices = @transform_2, window_bounds = array<i64: 1, 1, 8>}]} {
    %c0 = arith.constant 0 : index
    %c0_0 = arith.constant 0 : index
    %0 = vector.load %arg1[%c0, %c0_0] : memref<8x16xf32, #tpu.memory_space<vmem>>, vector<8x16xf32>
    %c0_1 = arith.constant 0 : index
    %c0_2 = arith.constant 0 : index
    %1 = vector.load %arg2[%c0_1, %c0_2] : memref<8x2xf32, #tpu.memory_space<vmem>>, vector<8x2xf32>
    %2 = vector.extract_strided_slice %1 {offsets = [0, 0], sizes = [8, 1], strides = [1, 1]} : vector<8x2xf32> to vector<8x1xf32>
    %3 = arith.fptosi %2 : vector<8x1xf32> to vector<8x1xi32>
    %4 = vector.extract_strided_slice %1 {offsets = [0, 1], sizes = [8, 1], strides = [1, 1]} : vector<8x2xf32> to vector<8x1xf32>
    %cst = arith.constant dense<0xFF800000> : vector<8xf32>
    %5 = vector.multi_reduction <maximumf>, %0, %cst [1] : vector<8x16xf32> to vector<8xf32>
    %6 = vector.shape_cast %5 : vector<8xf32> to vector<8x1xf32>
    %7 = vector.broadcast %6 : vector<8x1xf32> to vector<8x16xf32>
    %8 = arith.subf %0, %7 : vector<8x16xf32>
    %9 = math.exp %8 : vector<8x16xf32>
    %cst_3 = arith.constant dense<0.000000e+00> : vector<8xf32>
    %10 = vector.multi_reduction <add>, %9, %cst_3 [1] : vector<8x16xf32> to vector<8xf32>
    %11 = vector.shape_cast %10 : vector<8xf32> to vector<8x1xf32>
    %12 = tpu.iota {dimensions = array<i32: 1>} : vector<8x16xi32>
    %13 = vector.broadcast %3 : vector<8x1xi32> to vector<8x16xi32>
    %14 = arith.cmpi eq, %12, %13 : vector<8x16xi32>
    %cst_4 = arith.constant 0.000000e+00 : f32
    %15 = vector.broadcast %cst_4 : f32 to vector<8x16xf32>
    %16 = arith.select %14, %0, %15 : vector<8x16xi1>, vector<8x16xf32>
    %cst_5 = arith.constant dense<0.000000e+00> : vector<8xf32>
    %17 = vector.multi_reduction <add>, %16, %cst_5 [1] : vector<8x16xf32> to vector<8xf32>
    %18 = vector.shape_cast %17 : vector<8xf32> to vector<8x1xf32>
    %19 = arith.subf %18, %6 : vector<8x1xf32>
    %20 = math.log %11 : vector<8x1xf32>
    %21 = arith.subf %19, %20 : vector<8x1xf32>
    %cst_6 = arith.constant 0.000000e+00 : f32
    %22 = vector.broadcast %cst_6 : f32 to vector<8x1xf32>
    %23 = arith.minimumf %21, %22 : vector<8x1xf32>
    %24 = math.exp %23 : vector<8x1xf32>
    %cst_7 = arith.constant 1.000000e+00 : f32
    %25 = vector.broadcast %cst_7 : f32 to vector<8x1xf32>
    %26 = arith.subf %25, %24 : vector<8x1xf32>
    %27 = arith.mulf %26, %26 : vector<8x1xf32>
    %cst_8 = arith.constant 0.000000e+00 : f32
    %28 = vector.broadcast %cst_8 : f32 to vector<8x1xf32>
    %29 = arith.subf %28, %4 : vector<8x1xf32>
    %30 = arith.mulf %29, %27 : vector<8x1xf32>
    %31 = arith.mulf %30, %23 : vector<8x1xf32>
    %32 = tpu.iota {dimensions = array<i32: 0>} : vector<8x8xi32>
    %33 = tpu.iota {dimensions = array<i32: 1>} : vector<8x8xi32>
    %34 = arith.cmpi eq, %32, %33 : vector<8x8xi32>
    %cst_9 = arith.constant 0.000000e+00 : f32
    %35 = vector.shape_cast %31 : vector<8x1xf32> to vector<8x1xf32>
    %36 = vector.broadcast %35 : vector<8x1xf32> to vector<8x8xf32>
    %37 = vector.broadcast %cst_9 : f32 to vector<8x8xf32>
    %38 = arith.select %34, %36, %37 : vector<8x8xi1>, vector<8x8xf32>
    %cst_10 = arith.constant dense<0.000000e+00> : vector<8xf32>
    %39 = vector.multi_reduction <add>, %38, %cst_10 [0] : vector<8x8xf32> to vector<8xf32>
    %40 = vector.shape_cast %39 : vector<8xf32> to vector<1x8xf32>
    %c0_11 = arith.constant 0 : index
    %c0_12 = arith.constant 0 : index
    %c0_13 = arith.constant 0 : index
    %41 = vector.load %arg3[%c0_11, %c0_12, %c0_13] : memref<1x1x8xf32, #tpu.memory_space<vmem>>, vector<1x1x8xf32>
    %42 = vector.shape_cast %41 : vector<1x1x8xf32> to vector<1x8xf32>
    %43 = vector.shape_cast %40 : vector<1x8xf32> to vector<1x1x8xf32>
    tpu.vector_store %arg3[%c0_11, %c0_12, %c0_13], %43 {strides = array<i32>} : memref<1x1x8xf32, #tpu.memory_space<vmem>>, vector<1x1x8xf32>,
    return
  }
  func.func @transform_0(%arg0: i32) -> (i32, i32) {
    %c0_i32 = arith.constant 0 : i32
    %c0_i32_0 = arith.constant 0 : i32
    return %arg0, %c0_i32 : i32, i32
  }
  func.func @transform_1(%arg0: i32) -> (i32, i32) {
    %c0_i32 = arith.constant 0 : i32
    %c0_i32_0 = arith.constant 0 : i32
    return %arg0, %c0_i32 : i32, i32
  }
  func.func @transform_2(%arg0: i32) -> (i32, i32, i32) {
    %c0_i32 = arith.constant 0 : i32
    %c0_i32_0 = arith.constant 0 : i32
    %c0_i32_1 = arith.constant 0 : i32
    return %arg0, %c0_i32, %c0_i32_0 : i32, i32, i32
  }
}

</mosaic_0001>

<bundles_post_ra>
// kernel: tpu_custom_call.1
= control target key start
LH: loop header
LB: loop body
LE: loop exit
PB: predicated region body
PF: predicated region fallthrough
CT: control target
= control target key end

     0   :  { %vm15_vm0 = vcmask 130048   ;;  %s157_s0 = inlined_call_operand.vmem [shape: f32[8,16], index: 0, kind: input, shape index: {}]   ;;  %s158_s1 = inlined_call_operand.vmem [shape: f32[8,2], index: 1, kind: input, shape index: {}]   ;;  %s159_s2 = inlined_call_operand.hbm [shape: f32[1,1,8], index: 2, kind: output, shape index: {}]  }
   0x1   :  { %v12_v0 = vld [vmem:[%s157_s0] sm:$0xff] }
   0x2   :  { %7 = vsyncpa [#allocation3], 0  ;;  %v16_v1 = vsel %vm15_vm0, %v12_v0, -inf  ;;  %v118_v2 = vmov 0   ;;  %v13_v3 = vld [vmem:[%s158_s1] sm:$0xff]  ;;  %v25_v9 = vlaneseq  ;;  %v119_v16 = vmov 1  }
   0x3   :  { %85 = vset.pattern.permute.xlu0 %v118_v2  ;;  %v80_v4 = vtrunc.f32 %v13_v3  ;;  %86 = vset.pattern.permute.xlu1 %v119_v16  ;;  %v44_v26 = vsub.f32 0.0, %v13_v3  ;;  %vm56_vm3 = vcmask 64512   ;;  %s120_s0 = smov [#allocation2]   ;;  %vm64_vm4 = vcmask 57344  }
   0x4   :  { %17 = vmax.xlane.f32.xlu0 %v16_v1  ;;  %v26_v10 = vand.u32 127, %v25_v9  ;;  %v48_v31 = vshrl.u32 %v25_v9, 7  ;;  %s72_s1 = sshll.u32 %s120_s0, 4  ;;  %s73_s1 = int_to_ptr.vmem [resolvable:$true] %s72_s1 }
   0x5   :  { %v81_v5 = vcvt.f32.s32 %v80_v4  ;;  %s94_s13 = scalar_lea.vmem %s73_s1, 16  ;;  %s98_s14 = scalar_lea.vmem %s73_s1, 32 }
   0x6   :  { %vm49_vm2 = vcmp.eq.s32.totalorder %v48_v31, %v26_v10  ;;  %p95_p0 = scmp.ne.s32.totalorder %s73_s1, %s94_s13  ;;  %p99_p1 = scmp.lt.s32.totalorder %s73_s1, %s73_s1 }
   0x7   :  { %p100_p2 = scmp.lt.s32.totalorder %s98_s14, %s94_s13 }
   0x9   :  { %p101_p3 = por %p100_p2, %p99_p1 }
   0xb   :  { %p102_p4 = pnand %p101_p3, %p95_p0 }
  0x1a   :  { %28 = vperm.xlu0 %85, %v81_v5  }
  0x1e   :  { %87 = vset.pattern.permute.xlu0 %v119_v16 }
  0x91   :  { %v18_v6 = vpop.xlane.xlu0 %17 }
  0x92   :  { %v19_v7 = vsub.f32 %v12_v0, %v18_v6 }
  0x94   :  { %v20_v8 = vmul.f32 1.442695, %v19_v7 }
  0x96   :  { %88 = vpow2.f32 %v20_v8 }
  0x99   :  { %v29_v11 = vpop.permute.xlu0 %28 }
  0x9a   :  { %vm30_vm1 = vcmp.eq.s32.totalorder %v26_v10, %v29_v11 }
  0x9b   :  { %v31_v13 = vsel %vm30_vm1, %v12_v0, 0.0 }
  0x9c   :  { %v32_v15 = vsel %vm15_vm0, %v31_v13, 0.0 }
  0xa0   :  { %v89_v12 = vpop.eup %88 }
  0xa1   :  { %v22_v14 = vsel %vm15_vm0, %v89_v12, 0.0 }
  0xa2   :  { %23 = vadd.xlane.f32.xlu1 %v22_v14 }
  0xa6   :  { %33 = vadd.xlane.f32.xlu1 %v32_v15 }
 0x12f   :  { %v24_v17 = vpop.xlane.xlu1 %23 }
 0x130   :  { %90 = vlog2.f32 %v24_v17 }
 0x133   :  { %v34_v18 = vpop.xlane.xlu1 %33 }
 0x134   :  { %v35_v21 = vsub.f32 %v34_v18, %v18_v6 }
 0x13a   :  { %v91_v19 = vpop.eup %90 }
 0x13b   :  { %v37_v20 = vmul.f32 0.6931472, %v91_v19 }
 0x13d   :  { %v38_v22 = vsub.f32 %v35_v21, %v37_v20 }
 0x13f   :  { %v39_v23 = vmin.f32 %v38_v22, 0.0 }
 0x141   :  { %v40_v24 = vmul.f32 1.442695, %v39_v23 }
 0x143   :  { %92 = vpow2.f32 %v40_v24 }
 0x14d   :  { %v93_v25 = vpop.eup %92 }
 0x14e   :  { %v42_v27 = vsub.f32 1.0, %v93_v25 }
 0x150   :  { %v43_v28 = vmul.f32 %v42_v27, %v42_v27 }
 0x152   :  { %v45_v29 = vmul.f32 %v44_v26, %v43_v28 }
 0x154   :  { %v46_v30 = vmul.f32 %v45_v29, %v39_v23 }
 0x156   :  { %52 = vperm.xlu1 %86, %v46_v30  }
 0x1d5   :  { %v53_v32 = vpop.permute.xlu1 %52 }
 0x1d6   :  { %v55_v33 = vsel %vm49_vm2, %v53_v32, 0.0 }
 0x1d7   :  { %v57_v34 = vsel %vm56_vm3, %v55_v33, 0.0 }
 0x1d8   :  { %v58_v35 = vrot.slane %v57_v34, 4 }
 0x1da   :  { %v59_v36 = vadd.f32 %v58_v35, %v57_v34 }
 0x1dc   :  { %v60_v37 = vrot.slane %v59_v36, 2 }
 0x1de   :  { %v61_v38 = vadd.f32 %v60_v37, %v59_v36 }
 0x1e0   :  { %v62_v39 = vrot.slane %v61_v38, 1 }
 0x1e2   :  { %v63_v40 = vadd.f32 %v62_v39, %v61_v38 }
 0x1e4   :  { %65 = vst.msk [vmem:[#allocation2] sm:$0x1] %vm64_vm4, %v63_v40 }
 0x1e5   :  { %105 = shalt.err (!%p102_p4)
}
 0x1e6   :  { %s106_s17 = scalar_lea.hbm %s159_s2, 16 }
 0x1e7   :  { %p107_p5 = scmp.ne.s32.totalorder %s159_s2, %s106_s17  ;;  %p110_p6 = scmp.lt.u32.totalorder %s106_s17, %s159_s2 }
 0x1e9   :  { %p112_p7 = pnand %p110_p6, %p107_p5 }
 0x1eb   :  { %115 = shalt.err (!%p112_p7)
}
 0x1ec   :  { %75 = dma.vmem_to_hbm [thread:$0]  %s73_s1, 16, %s159_s2, [#allocation3]  }
 0x1ed   :  { %116 = dma.done.wait [#allocation3], 16  }
 0x1ee   :  { %117 = vsyncadd [#allocation3], 4294967280 }
 0x1ef   :  { %79 = vsyncpa [#allocation3], 1 }

</bundles_post_ra>
